<compile_context>
chip_gen: v7x
topology: tpu7x:2x2x1
jax: 0.10.0
libtpu: 0.0.40
codegen_flags: <defaults>
</compile_context>

<pallas_src>
import functools

import jax
import jax.numpy as jnp
from jax import lax
from jax.experimental import pallas as pl
from jax.experimental.pallas import tpu as pltpu


def _fused_embed_kernel(x_ref, w1_ref, w2_ref, o_ref, *, H, W):
    """Fused conv3x3 -> conv3x3 for one batch element.

    x_ref:  (1, Cin,  H*W)   input, spatial flattened on the lane axis
    w1_ref: (Cmid, 9*Cin)    conv1 weight, taps stacked on the contraction dim
    w2_ref: (Cout, 9*Cmid)   conv2 weight
    o_ref:  (1, Cout, H*W)   output
    """
    HW = H * W
    pad = W + 1  # max |flat offset| of a 3x3 tap

    # Column index of each flattened spatial position; masks the horizontal taps
    # that would otherwise leak across row boundaries in the flat layout.
    col = lax.broadcasted_iota(jnp.int32, (1, HW), 1) % W
    keep_left = col >= 1          # tap reads (j - 1): invalid at j == 0
    keep_right = col <= (W - 2)   # tap reads (j + 1): invalid at j == W - 1

    def im2col(a):
        """a: (C, HW) -> (9*C, HW) tap-stacked operand with zero-pad semantics."""
        C = a.shape[0]
        z = jnp.zeros((C, pad), a.dtype)
        az = jnp.concatenate([z, a, z], axis=1)   # zero halo along lanes
        taps = []
        for kh in range(3):
            for kw in range(3):
                d = (kh - 1) * W + (kw - 1)       # flat source offset of this tap
                t = a if d == 0 else az[:, pad + d: pad + d + HW]
                if kw == 0:
                    t = jnp.where(keep_left, t, 0.0)
                elif kw == 2:
                    t = jnp.where(keep_right, t, 0.0)
                taps.append(t)
        # Row k = (kh*3 + kw) * C + c, matching the weight reshape in the wrapper.
        return jnp.concatenate(taps, axis=0)

    x = x_ref[0]                                                  # (Cin, HW)
    h = jnp.dot(w1_ref[...], im2col(x),
                preferred_element_type=jnp.float32)               # (Cmid, HW) f32
    y = jnp.dot(w2_ref[...], im2col(h),
                preferred_element_type=jnp.float32)               # (Cout, HW) f32
    o_ref[0] = y.astype(o_ref.dtype)


def overlap_patch_embed2(x_nchw, w1_oihw, w2_oihw):
    """Forward of OverlapPatchEmbed2: conv2(conv1(x)), both 3x3/s1/p1, no bias.

    x_nchw:  (N, 2*in_c, H, W)
    w1_oihw: (embed_dim//2, 2*in_c, 3, 3)
    w2_oihw: (embed_dim, embed_dim//2, 3, 3)
    returns  (N, embed_dim, H, W)
    """
    N, Cin, H, W = x_nchw.shape
    Cmid = w1_oihw.shape[0]
    Cout = w2_oihw.shape[0]
    HW = H * W

    # Free reshapes: NCHW is row-major contiguous over (H, W).
    x_flat = x_nchw.reshape(N, Cin, HW)
    # Taps stacked on the contraction dim: k = (kh*3 + kw) * C + c.
    w1_2d = jnp.transpose(w1_oihw, (0, 2, 3, 1)).reshape(Cmid, 9 * Cin)
    w2_2d = jnp.transpose(w2_oihw, (0, 2, 3, 1)).reshape(Cout, 9 * Cmid)

    # TODO(synk): for large H*W (esp. v7x 64 MiB VMEM) add a row-band grid axis
    # with a 2-row halo instead of whole-image blocks and raise vmem_limit_bytes.
    out = pl.pallas_call(
        functools.partial(_fused_embed_kernel, H=H, W=W),
        out_shape=jax.ShapeDtypeStruct((N, Cout, HW), x_nchw.dtype),
        grid_spec=pltpu.PrefetchScalarGridSpec(
            num_scalar_prefetch=0,
            grid=(N,),
            in_specs=[
                pl.BlockSpec((1, Cin, HW), lambda n: (n, 0, 0)),
                pl.BlockSpec((Cmid, 9 * Cin), lambda n: (0, 0)),
                pl.BlockSpec((Cout, 9 * Cmid), lambda n: (0, 0)),
            ],
            out_specs=pl.BlockSpec((1, Cout, HW), lambda n: (n, 0, 0)),
        ),
        compiler_params=pltpu.CompilerParams(
            dimension_semantics=("parallel",)),
    )(x_flat, w1_2d, w2_2d)

    return out.reshape(N, Cout, H, W)


def _reference(x_nchw, w1_oihw, w2_oihw):
    dn = lax.conv_dimension_numbers(x_nchw.shape, w1_oihw.shape,
                                    ("NCHW", "OIHW", "NCHW"))
    y = lax.conv_general_dilated(x_nchw, w1_oihw, (1, 1), "SAME",
                                 dimension_numbers=dn,
                                 precision=lax.Precision.HIGHEST)
    y = lax.conv_general_dilated(y, w2_oihw, (1, 1), "SAME",
                                 dimension_numbers=dn,
                                 precision=lax.Precision.HIGHEST)
    return y


if __name__ == "__main__":
    # in_c=4 -> conv1 input channels 2*in_c=8; embed_dim=32 -> hidden 16, out 32.
    N, in_c, embed_dim, H, W = 2, 4, 32, 16, 16
    key = jax.random.PRNGKey(0)
    kx, kw1, kw2 = jax.random.split(key, 3)

    x = jax.random.normal(kx, (N, in_c * 2, H, W), dtype=jnp.float32)
    w1 = jax.random.normal(kw1, (embed_dim // 2, in_c * 2, 3, 3),
                           dtype=jnp.float32) * 0.1
    w2 = jax.random.normal(kw2, (embed_dim, embed_dim // 2, 3, 3),
                           dtype=jnp.float32) * 0.1

    out = jax.block_until_ready(overlap_patch_embed2(x, w1, w2))
    ref = jax.block_until_ready(_reference(x, w1, w2))

    assert out.shape == (N, embed_dim, H, W)
    assert jnp.allclose(out, ref, atol=1e-3, rtol=1e-3), \
        float(jnp.max(jnp.abs(out - ref)))
    print("KERNEL_OK")
</pallas_src>

<mosaic_0001>
module attributes {stable_mosaic.version = 11 : i64} {
  func.func @_fused_embed_kernel(%arg0: i32, %arg1: memref<1x8x256xf32, #tpu.memory_space<vmem>>, %arg2: memref<16x72xf32, #tpu.memory_space<vmem>>, %arg3: memref<32x144xf32, #tpu.memory_space<vmem>>, %arg4: memref<1x32x256xf32, #tpu.memory_space<vmem>>) attributes {dimension_semantics = [#tpu.dimension_semantics<parallel>], iteration_bounds = array<i64: 2>, scalar_prefetch = 0 : i64, scratch_operands = 0 : i64, tpu.core_type = #tpu.core_type<tc>, window_params = [{transform_indices = @transform_0, window_bounds = array<i64: 1, 8, 256>}, {pipeline_mode = #tpu.pipeline_mode<synchronous>, transform_indices = @transform_1, window_bounds = array<i64: 16, 72>}, {pipeline_mode = #tpu.pipeline_mode<synchronous>, transform_indices = @transform_2, window_bounds = array<i64: 32, 144>}, {transform_indices = @transform_3, window_bounds = array<i64: 1, 32, 256>}]} {
    %0 = tpu.iota {dimensions = array<i32: 1>} : vector<1x256xi32>
    %c16_i32 = arith.constant 16 : i32
    %c0_i32 = arith.constant 0 : i32
    %1 = arith.cmpi eq, %c16_i32, %c0_i32 : i32
    %c1_i32 = arith.constant 1 : i32
    %2 = arith.select %1, %c1_i32, %c16_i32 : i32
    %3 = vector.broadcast %2 : i32 to vector<1x256xi32>
    %4 = arith.remsi %0, %3 : vector<1x256xi32>
    %c0_i32_0 = arith.constant 0 : i32
    %5 = vector.broadcast %c0_i32_0 : i32 to vector<1x256xi32>
    %6 = arith.cmpi ne, %4, %5 : vector<1x256xi32>
    %c0_i32_1 = arith.constant 0 : i32
    %7 = vector.broadcast %c0_i32_1 : i32 to vector<1x256xi32>
    %8 = arith.cmpi slt, %4, %7 : vector<1x256xi32>
    %c0_i32_2 = arith.constant 0 : i32
    %9 = arith.cmpi slt, %2, %c0_i32_2 : i32
    %10 = vector.broadcast %9 : i1 to vector<1x256xi1>
    %11 = vector.broadcast %10 : vector<1x256xi1> to vector<1x256xi1>
    %12 = arith.xori %8, %11 : vector<1x256xi1>
    %13 = arith.andi %12, %6 : vector<1x256xi1>
    %14 = vector.broadcast %2 : i32 to vector<1x256xi32>
    %15 = arith.addi %4, %14 : vector<1x256xi32>
    %16 = arith.select %13, %15, %4 : vector<1x256xi1>, vector<1x256xi32>
    %c1_i32_3 = arith.constant 1 : i32
    %17 = vector.broadcast %c1_i32_3 : i32 to vector<1x256xi32>
    %18 = arith.cmpi sge, %16, %17 : vector<1x256xi32>
    %c14_i32 = arith.constant 14 : i32
    %19 = vector.broadcast %c14_i32 : i32 to vector<1x256xi32>
    %20 = arith.cmpi sle, %16, %19 : vector<1x256xi32>
    %c0 = arith.constant 0 : index
    %c0_4 = arith.constant 0 : index
    %c0_5 = arith.constant 0 : index
    %21 = vector.load %arg1[%c0, %c0_4, %c0_5] : memref<1x8x256xf32, #tpu.memory_space<vmem>>, vector<1x8x256xf32>
    %22 = vector.shape_cast %21 : vector<1x8x256xf32> to vector<8x256xf32>
    %c0_6 = arith.constant 0 : index
    %c0_7 = arith.constant 0 : index
    %23 = vector.load %arg2[%c0_6, %c0_7] : memref<16x72xf32, #tpu.memory_space<vmem>>, vector<16x72xf32>
    %cst = arith.constant 0.000000e+00 : f32
    %24 = vector.broadcast %cst : f32 to vector<8x17xf32>
    %25 = tpu.concatenate %24, %22, %24 in 1 : vector<8x17xf32>, vector<8x256xf32>, vector<8x17xf32> -> vector<8x290xf32>
    %26 = vector.extract_strided_slice %25 {offsets = [0, 0], sizes = [8, 256], strides = [1, 1]} : vector<8x290xf32> to vector<8x256xf32>
    %cst_8 = arith.constant 0.000000e+00 : f32
    %27 = vector.shape_cast %18 : vector<1x256xi1> to vector<1x256xi1>
    %28 = vector.broadcast %27 : vector<1x256xi1> to vector<8x256xi1>
    %29 = vector.broadcast %cst_8 : f32 to vector<8x256xf32>
    %30 = arith.select %28, %26, %29 : vector<8x256xi1>, vector<8x256xf32>
    %31 = vector.extract_strided_slice %25 {offsets = [0, 1], sizes = [8, 256], strides = [1, 1]} : vector<8x290xf32> to vector<8x256xf32>
    %32 = vector.extract_strided_slice %25 {offsets = [0, 2], sizes = [8, 256], strides = [1, 1]} : vector<8x290xf32> to vector<8x256xf32>
    %cst_9 = arith.constant 0.000000e+00 : f32
    %33 = vector.shape_cast %20 : vector<1x256xi1> to vector<1x256xi1>
    %34 = vector.broadcast %33 : vector<1x256xi1> to vector<8x256xi1>
    %35 = vector.broadcast %cst_9 : f32 to vector<8x256xf32>
    %36 = arith.select %34, %32, %35 : vector<8x256xi1>, vector<8x256xf32>
    %37 = vector.extract_strided_slice %25 {offsets = [0, 16], sizes = [8, 256], strides = [1, 1]} : vector<8x290xf32> to vector<8x256xf32>
    %cst_10 = arith.constant 0.000000e+00 : f32
    %38 = vector.shape_cast %18 : vector<1x256xi1> to vector<1x256xi1>
    %39 = vector.broadcast %38 : vector<1x256xi1> to vector<8x256xi1>
    %40 = vector.broadcast %cst_10 : f32 to vector<8x256xf32>
    %41 = arith.select %39, %37, %40 : vector<8x256xi1>, vector<8x256xf32>
    %42 = vector.extract_strided_slice %25 {offsets = [0, 18], sizes = [8, 256], strides = [1, 1]} : vector<8x290xf32> to vector<8x256xf32>
    %cst_11 = arith.constant 0.000000e+00 : f32
    %43 = vector.shape_cast %20 : vector<1x256xi1> to vector<1x256xi1>
    %44 = vector.broadcast %43 : vector<1x256xi1> to vector<8x256xi1>
    %45 = vector.broadcast %cst_11 : f32 to vector<8x256xf32>
    %46 = arith.select %44, %42, %45 : vector<8x256xi1>, vector<8x256xf32>
    %47 = vector.extract_strided_slice %25 {offsets = [0, 32], sizes = [8, 256], strides = [1, 1]} : vector<8x290xf32> to vector<8x256xf32>
    %cst_12 = arith.constant 0.000000e+00 : f32
    %48 = vector.shape_cast %18 : vector<1x256xi1> to vector<1x256xi1>
    %49 = vector.broadcast %48 : vector<1x256xi1> to vector<8x256xi1>
    %50 = vector.broadcast %cst_12 : f32 to vector<8x256xf32>
    %51 = arith.select %49, %47, %50 : vector<8x256xi1>, vector<8x256xf32>
    %52 = vector.extract_strided_slice %25 {offsets = [0, 33], sizes = [8, 256], strides = [1, 1]} : vector<8x290xf32> to vector<8x256xf32>
    %53 = vector.extract_strided_slice %25 {offsets = [0, 34], sizes = [8, 256], strides = [1, 1]} : vector<8x290xf32> to vector<8x256xf32>
    %cst_13 = arith.constant 0.000000e+00 : f32
    %54 = vector.shape_cast %20 : vector<1x256xi1> to vector<1x256xi1>
    %55 = vector.broadcast %54 : vector<1x256xi1> to vector<8x256xi1>
    %56 = vector.broadcast %cst_13 : f32 to vector<8x256xf32>
    %57 = arith.select %55, %53, %56 : vector<8x256xi1>, vector<8x256xf32>
    %58 = tpu.concatenate %30, %31, %36, %41, %22, %46, %51, %52, %57 in 0 : vector<8x256xf32>, vector<8x256xf32>, vector<8x256xf32>, vector<8x256xf32>, vector<8x256xf32>, vector<8x256xf32>, vector<8x256xf32>, vector<8x256xf32>, vector<8x256xf32> -> vector<72x256xf32>
    %cst_14 = arith.constant dense<0.000000e+00> : vector<16x256xf32>
    %59 = tpu.matmul %23, %58, %cst_14 {dimension_numbers = #tpu.dot_dimension_numbers<[1], [0], [0], [1], [0, 0, 1, 1], [], []>} : vector<16x72xf32>, vector<72x256xf32>, vector<16x256xf32> -> vector<16x256xf32>
    %c0_15 = arith.constant 0 : index
    %c0_16 = arith.constant 0 : index
    %60 = vector.load %arg3[%c0_15, %c0_16] : memref<32x144xf32, #tpu.memory_space<vmem>>, vector<32x144xf32>
    %cst_17 = arith.constant 0.000000e+00 : f32
    %61 = vector.broadcast %cst_17 : f32 to vector<16x17xf32>
    %62 = tpu.concatenate %61, %59, %61 in 1 : vector<16x17xf32>, vector<16x256xf32>, vector<16x17xf32> -> vector<16x290xf32>
    %63 = vector.extract_strided_slice %62 {offsets = [0, 0], sizes = [16, 256], strides = [1, 1]} : vector<16x290xf32> to vector<16x256xf32>
    %cst_18 = arith.constant 0.000000e+00 : f32
    %64 = vector.shape_cast %18 : vector<1x256xi1> to vector<1x256xi1>
    %65 = vector.broadcast %64 : vector<1x256xi1> to vector<16x256xi1>
    %66 = vector.broadcast %cst_18 : f32 to vector<16x256xf32>
    %67 = arith.select %65, %63, %66 : vector<16x256xi1>, vector<16x256xf32>
    %68 = vector.extract_strided_slice %62 {offsets = [0, 1], sizes = [16, 256], strides = [1, 1]} : vector<16x290xf32> to vector<16x256xf32>
    %69 = vector.extract_strided_slice %62 {offsets = [0, 2], sizes = [16, 256], strides = [1, 1]} : vector<16x290xf32> to vector<16x256xf32>
    %cst_19 = arith.constant 0.000000e+00 : f32
    %70 = vector.shape_cast %20 : vector<1x256xi1> to vector<1x256xi1>
    %71 = vector.broadcast %70 : vector<1x256xi1> to vector<16x256xi1>
    %72 = vector.broadcast %cst_19 : f32 to vector<16x256xf32>
    %73 = arith.select %71, %69, %72 : vector<16x256xi1>, vector<16x256xf32>
    %74 = vector.extract_strided_slice %62 {offsets = [0, 16], sizes = [16, 256], strides = [1, 1]} : vector<16x290xf32> to vector<16x256xf32>
    %cst_20 = arith.constant 0.000000e+00 : f32
    %75 = vector.shape_cast %18 : vector<1x256xi1> to vector<1x256xi1>
    %76 = vector.broadcast %75 : vector<1x256xi1> to vector<16x256xi1>
    %77 = vector.broadcast %cst_20 : f32 to vector<16x256xf32>
    %78 = arith.select %76, %74, %77 : vector<16x256xi1>, vector<16x256xf32>
    %79 = vector.extract_strided_slice %62 {offsets = [0, 18], sizes = [16, 256], strides = [1, 1]} : vector<16x290xf32> to vector<16x256xf32>
    %cst_21 = arith.constant 0.000000e+00 : f32
    %80 = vector.shape_cast %20 : vector<1x256xi1> to vector<1x256xi1>
    %81 = vector.broadcast %80 : vector<1x256xi1> to vector<16x256xi1>
    %82 = vector.broadcast %cst_21 : f32 to vector<16x256xf32>
    %83 = arith.select %81, %79, %82 : vector<16x256xi1>, vector<16x256xf32>
    %84 = vector.extract_strided_slice %62 {offsets = [0, 32], sizes = [16, 256], strides = [1, 1]} : vector<16x290xf32> to vector<16x256xf32>
    %cst_22 = arith.constant 0.000000e+00 : f32
    %85 = vector.shape_cast %18 : vector<1x256xi1> to vector<1x256xi1>
    %86 = vector.broadcast %85 : vector<1x256xi1> to vector<16x256xi1>
    %87 = vector.broadcast %cst_22 : f32 to vector<16x256xf32>
    %88 = arith.select %86, %84, %87 : vector<16x256xi1>, vector<16x256xf32>
    %89 = vector.extract_strided_slice %62 {offsets = [0, 33], sizes = [16, 256], strides = [1, 1]} : vector<16x290xf32> to vector<16x256xf32>
    %90 = vector.extract_strided_slice %62 {offsets = [0, 34], sizes = [16, 256], strides = [1, 1]} : vector<16x290xf32> to vector<16x256xf32>
    %cst_23 = arith.constant 0.000000e+00 : f32
    %91 = vector.shape_cast %20 : vector<1x256xi1> to vector<1x256xi1>
    %92 = vector.broadcast %91 : vector<1x256xi1> to vector<16x256xi1>
    %93 = vector.broadcast %cst_23 : f32 to vector<16x256xf32>
    %94 = arith.select %92, %90, %93 : vector<16x256xi1>, vector<16x256xf32>
    %95 = tpu.concatenate %67, %68, %73, %78, %59, %83, %88, %89, %94 in 0 : vector<16x256xf32>, vector<16x256xf32>, vector<16x256xf32>, vector<16x256xf32>, vector<16x256xf32>, vector<16x256xf32>, vector<16x256xf32>, vector<16x256xf32>, vector<16x256xf32> -> vector<144x256xf32>
    %cst_24 = arith.constant dense<0.000000e+00> : vector<32x256xf32>
    %96 = tpu.matmul %60, %95, %cst_24 {dimension_numbers = #tpu.dot_dimension_numbers<[1], [0], [0], [1], [0, 0, 1, 1], [], []>} : vector<32x144xf32>, vector<144x256xf32>, vector<32x256xf32> -> vector<32x256xf32>
    %c0_25 = arith.constant 0 : index
    %c0_26 = arith.constant 0 : index
    %c0_27 = arith.constant 0 : index
    %97 = vector.load %arg4[%c0_25, %c0_26, %c0_27] : memref<1x32x256xf32, #tpu.memory_space<vmem>>, vector<1x32x256xf32>
    %98 = vector.shape_cast %97 : vector<1x32x256xf32> to vector<32x256xf32>
    %99 = vector.shape_cast %96 : vector<32x256xf32> to vector<1x32x256xf32>
    tpu.vector_store %arg4[%c0_25, %c0_26, %c0_27], %99 {strides = array<i32>} : memref<1x32x256xf32, #tpu.memory_space<vmem>>, vector<1x32x256xf32>,
    return
  }
  func.func @transform_0(%arg0: i32) -> (i32, i32, i32) {
    %c0_i32 = arith.constant 0 : i32
    %c0_i32_0 = arith.constant 0 : i32
    %c0_i32_1 = arith.constant 0 : i32
    return %arg0, %c0_i32, %c0_i32_0 : i32, i32, i32
  }
  func.func @transform_1(%arg0: i32) -> (i32, i32) {
    %c0_i32 = arith.constant 0 : i32
    %c0_i32_0 = arith.constant 0 : i32
    %c0_i32_1 = arith.constant 0 : i32
    return %c0_i32, %c0_i32_0 : i32, i32
  }
  func.func @transform_2(%arg0: i32) -> (i32, i32) {
    %c0_i32 = arith.constant 0 : i32
    %c0_i32_0 = arith.constant 0 : i32
    %c0_i32_1 = arith.constant 0 : i32
    return %c0_i32, %c0_i32_0 : i32, i32
  }
  func.func @transform_3(%arg0: i32) -> (i32, i32, i32) {
    %c0_i32 = arith.constant 0 : i32
    %c0_i32_0 = arith.constant 0 : i32
    %c0_i32_1 = arith.constant 0 : i32
    return %arg0, %c0_i32, %c0_i32_0 : i32, i32, i32
  }
}

</mosaic_0001>

<bundles_post_ra>
// kernel: tpu_custom_call.1
= control target key start
LH: loop header
LB: loop body
LE: loop exit
PB: predicated region body
PF: predicated region fallthrough
CT: control target
= control target key end

     0   :  { %8 = vsyncpa [#allocation3], 0  ;;  %s1890_s0 = inlined_call_operand.hbm [shape: f32[2,8,256], index: 0, kind: input, shape index: {}]   ;;  %s1891_s1 = inlined_call_operand.hbm [shape: f32[16,72], index: 1, kind: input, shape index: {}]   ;;  %s1892_s2 = inlined_call_operand.hbm [shape: f32[32,144], index: 2, kind: input, shape index: {}]   ;;  %s1893_s3 = inlined_call_operand.hbm [shape: f32[2,32,256], index: 3, kind: output, shape index: {}]  }
   0x1   :  { %10 = vsyncpa [#allocation3 + $0x1], 0 }
   0x2   :  { %11 = vsyncpa [#allocation6], 0 }
   0x3   :  { %12 = vsyncpa [#allocation4], 0 }
   0x4   :  { %14 = vsyncpa [#allocation4 + $0x1], 0  ;;  %s1423_s12 = smov 0   ;;  %s1425_s13 = smov 0  }
   0x5   :  { %s1427_s14 = smov 0   ;;  %s1429_s15 = smov 0  }
   0x6 LB: > { %s1444_s16 = sadd.s32 4294967295, %s1381_s15   ;;  %s863_s17 = sadd.s32 4294967294, %s1381_s15   ;;  %s1381_s15 = sphi %s1429_s15, %s1938_s15   ;;  %s1377_s14 = sphi %s1427_s14, %s1937_s14   ;;  %s1373_s13 = sphi %s1425_s13, %s1936_s13   ;;  %s1369_s12 = sphi %s1423_s12, %s1935_s12  }
   0x7   : > { %p40_p0 = scmp.ne.s32.totalorder %s1373_s13, %s1369_s12  ;;  %p1894_p1 = scmp.eq.s32.totalorder %s1444_s16, 0 }
   0x8   : > { %p112_p3 = scmp.eq.s32.totalorder %s863_s17, 1  ;;  %p864_p5 = scmp.ge.s32.totalorder %s1381_s15, 1 }
   0x9   : > { %p1453_p4 = por %p1894_p1, %p40_p0  ;;  %p119_p7 = scmp.lt.s32.totalorder %s1381_s15, 3 }
   0xa   : > { %p1458_p6 = por %p112_p3, %p40_p0  ;;  %s1383_s21 = smov [#allocation5]  }
   0xb   : > { %s1898_s18 = scalar_select %p1453_p4, 1, 0 }
   0xc   : > { %s1899_s19 = scalar_select %p1458_p6, 1, 0 }
   0xd   : > { %p1463_p8 = pnand %p864_p5, %p119_p7  ;;  %s131_s22 = sshll.u32 %s1383_s21, 4  ;;  %s1467_s22 = int_to_ptr.vmem [resolvable:$true] %s131_s22 }
   0xe   : > { %s1384_s24 = smov [#allocation7]   ;;  %s1225_s28 = scalar_lea.hbm %s1891_s1, 256 }
   0xf   : > { %p1009_p9 = pneg %p1463_p8  ;;  %s144_s25 = sshll.u32 %s1384_s24, 4  ;;  %s1478_s25 = int_to_ptr.vmem [resolvable:$true] %s144_s25 }
  0x10   : > { %p1226_p12 = scmp.ne.s32.totalorder %s1891_s1, %s1225_s28  ;;  %p1232_p5 = scmp.lt.u32.totalorder %s1225_s28, %s1891_s1 }
  0x11   : > { %p1474_p11 = pnand %p1009_p9, %p1894_p1 }
  0x13   : > { %p1227_p13 = pneg %p1474_p11 }
  0x15   : > { %p1228_p0 = pnand %p1227_p13, %p1226_p12 }
  0x17   : > { %p1229_p3 = pneg %p1228_p0 }
  0x19   : > { %p1234_p7 = pnand %p1232_p5, %p1229_p3 }
  0x1b   : > { %1237 = shalt.err (!%p1234_p7)
}
  0x1c   : > { %s1238_s6 = scalar_lea.vmem %s1467_s22, 256  ;;  %p1246_p2 = scmp.lt.s32.totalorder %s1467_s22, %s1467_s22 }
  0x1d   : > { %p1239_p9 = scmp.ne.s32.totalorder %s1467_s22, %s1238_s6  ;;  %p1247_p12 = scmp.lt.s32.totalorder %s1238_s6, %s1238_s6 }
  0x1f   : > { %p1241_p10 = pnand %p1239_p9, %p1227_p13  ;;  %p1248_p0 = por %p1247_p12, %p1246_p2 }
  0x21   : > { %p1242_p1 = pneg %p1241_p10 }
  0x23   : > { %p1249_p6 = pnand %p1248_p0, %p1242_p1 }
  0x25   : > { %1252 = shalt.err (!%p1249_p6)
}
  0x26   : > { %s1385_s7 = smov 128   ;;  %s1386_s8 = smov 8  }
  0x27   : > { %1012 = dma.hbm_to_vmem [thread:$0]  (!%p1474_p11), %s1891_s1, 256, %s1467_s22, [#allocation6], %s1385_s7, %s1385_s7, %s1386_s8  }
  0x28   : > { %s1253_s21 = scalar_lea.hbm %s1892_s2, 1024 }
  0x29   : > { %p1254_p2 = scmp.ne.s32.totalorder %s1892_s2, %s1253_s21  ;;  %p1260_p10 = scmp.lt.u32.totalorder %s1253_s21, %s1892_s2 }
  0x2b   : > { %p1256_p1 = pnand %p1254_p2, %p1227_p13 }
  0x2d   : > { %p1257_p6 = pneg %p1256_p1 }
  0x2f   : > { %p1262_p3 = pnand %p1260_p10, %p1257_p6 }
  0x31   : > { %1265 = shalt.err (!%p1262_p3)
}
  0x32   : > { %s1266_s22 = scalar_lea.vmem %s1478_s25, 1024  ;;  %p1274_p12 = scmp.lt.s32.totalorder %s1478_s25, %s1478_s25 }
  0x33   : > { %p1267_p5 = scmp.ne.s32.totalorder %s1478_s25, %s1266_s22  ;;  %p1275_p0 = scmp.lt.s32.totalorder %s1266_s22, %s1266_s22 }
  0x35   : > { %p1269_p7 = pnand %p1267_p5, %p1227_p13  ;;  %p1276_p2 = por %p1275_p0, %p1274_p12 }
  0x37   : > { %p1270_p9 = pneg %p1269_p7 }
  0x39   : > { %p1277_p1 = pnand %p1276_p2, %p1270_p9 }
  0x3b   : > { %1280 = shalt.err (!%p1277_p1)
}
  0x3c   : > { %s1387_s29 = smov 256   ;;  %s1388_s30 = smov 16  }
  0x3d   : > { %1015 = dma.hbm_to_vmem [thread:$0]  (!%p1474_p11), %s1892_s2, 1024, %s1478_s25, [#allocation6], %s1387_s29, %s1387_s29, %s1388_s30  }
  0x3e   : > { %s1533_s6 = sadd.s32 1, %s1381_s15   ;;  %s27_s8 = sadd.s32 1, %s1377_s14 }
  0x3f   : > { %s24_s7 = ssub.s32 %s1381_s15, %s1533_s6  ;;  %p34_p6 = scmp.ne.s32.totalorder %s1377_s14, %s1373_s13 }
  0x40   : > { %p25_p13 = scmp.eq.s32.totalorder %s24_s7, 0  ;;  %p35_p10 = scmp.eq.s32.totalorder %s1381_s15, 0 }
  0x41   : > { %p1902_p5 = scmp.eq.s32.totalorder %s1444_s16, 1  ;;  %p1026_p9 = scmp.lt.s32.totalorder %s1381_s15, 2 }
  0x42   : > { %s1542_s9 = scalar_select %p25_p13, %s1377_s14, %s27_s8  }
  0x43   : > { %p36_p3 = por %p35_p10, %p34_p6  ;;  %p1546_p7 = por %p1902_p5, %p34_p6 }
  0x44   : > { %s158_s23 = sand.u32 1, %s1377_s14   ;;  %s923_s25 = sshll.u32 %s1381_s15, 8 }
  0x45   : > { %s1903_s10 = scalar_select %p1546_p7, 1, 0 }
  0x46   : > { %s868_s11 = sshll.u32 %s158_s23, 4  ;;  %s1556_s24 = scalar_lea.hbm %s1890_s0, %s923_s25 }
  0x47   : > { %s162_s26 = scalar_lea.vmem [#allocation2], %s868_s11  ;;  %p1560_p11 = pnand %p1026_p9, %p36_p3 }
  0x48   : > { %s170_s27 = sshll.u32 %s162_s26, 4  ;;  %s159_s22 = scalar_lea.sflag [#allocation3], %s158_s23  ;;  %s1558_s27 = int_to_ptr.vmem [resolvable:$true] %s170_s27 }
  0x49   : > { %s1281_s29 = scalar_lea.hbm %s1556_s24, 256  ;;  %p1283_p0 = pneg %p1560_p11 }
  0x4a   : > { %p1282_p12 = scmp.ne.s32.totalorder %s1556_s24, %s1281_s29  ;;  %s1286_s5 = scalar_lea.hbm %s1890_s0, 512 }
  0x4b   : > { %p1287_p13 = scmp.lt.u32.totalorder %s1556_s24, %s1890_s0  ;;  %p1288_p6 = scmp.lt.u32.totalorder %s1286_s5, %s1281_s29 }
  0x4c   : > { %p1284_p2 = pnand %p1283_p0, %p1282_p12  ;;  %p1290_p3 = scmp.lt.u32.totalorder %s1281_s29, %s1556_s24 }
  0x4d   : > { %p1289_p10 = por %p1288_p6, %p1287_p13 }
  0x4e   : > { %p1285_p1 = pneg %p1284_p2 }
  0x4f   : > { %p1291_p5 = por %p1290_p3, %p1289_p10 }
  0x51   : > { %p1292_p9 = pnand %p1291_p5, %p1285_p1 }
  0x53   : > { %1295 = shalt.err (!%p1292_p9)
}
  0x54   : > { %s1296_s23 = scalar_lea.vmem %s1558_s27, 256  ;;  %s1389_s11 = smov [#allocation2]  }
  0x55   : > { %p1297_p12 = scmp.ne.s32.totalorder %s1558_s27, %s1296_s23  ;;  %s1301_s25 = sshll.u32 %s1389_s11, 4  ;;  %s1302_s25 = int_to_ptr.vmem [resolvable:$false] %s1301_s25 }
  0x56   : > { %s1303_s17 = scalar_lea.vmem %s1302_s25, 512  ;;  %p1304_p4 = scmp.lt.s32.totalorder %s1558_s27, %s1302_s25 }
  0x57   : > { %p1299_p2 = pnand %p1297_p12, %p1283_p0  ;;  %p1305_p13 = scmp.lt.s32.totalorder %s1303_s17, %s1296_s23 }
  0x59   : > { %p1300_p7 = pneg %p1299_p2  ;;  %p1306_p6 = por %p1305_p13, %p1304_p4 }
  0x5b   : > { %p1307_p10 = pnand %p1306_p6, %p1300_p7 }
  0x5d   : > { %1310 = shalt.err (!%p1307_p10)
}
  0x5e   : > { %1019 = dma.hbm_to_vmem [thread:$0]  (!%p1560_p11), %s1556_s24, 256, %s1558_s27, %s159_s22  }
  0x5f   : > { %179 = sbr.rel (%p1463_p8) target bundleno = 1114 (0x45a), region = 32  ;;  %s1592_s21 = sand.u32 (!%p1463_p8), 1, %s1373_s13  }
  0x60   : > { %s872_s26 = sshll.u32 (!%p1463_p8), %s1592_s21, 4  ;;  %s182_s29 = scalar_lea.sflag (!%p1463_p8), [#allocation3], %s1592_s21 }
  0x61   : > { %s185_s30 = scalar_lea.vmem (!%p1463_p8), [#allocation2], %s872_s26  ;;  %p1905_p4 = scmp.ne.s32.totalorder (!%p1463_p8), %s1898_s18, 0 }
  0x66   : > { %1356 = dma.done.wait (%p1905_p4), %s182_s29, 256  }
  0x67   : > { %1358 = vsyncadd (%p1905_p4), %s182_s29, 4294967040  ;;  %p1906_p7 = scmp.eq.s32.totalorder %s1444_s16, 0 }
  0x69   : > { %1360 = dma.done.wait (%p1906_p7), [#allocation6], 1280   ;;  %p1907_p11 = pmov %p1906_p7 }
  0x6a   : > { %v1604_v0 = vld [vmem:[%s185_s30] sm:$0xff]  ;;  %s1390_s20 = smov 17   ;;  %v1608_v1 = vld [vmem:[%s185_s30 + $0x8] sm:$0xff]  ;;  %vm257_vm0 = vcmask 138240   ;;  %s1391_s18 = smov 126   ;;  %v1396_v8 = vmov 0.0   ;;  %v216_v9 = vlaneseq }
  0x6b   : > { %1362 = vsyncadd (%p1907_p11), [#allocation6], 4294966016  ;;  %253 = vrot.lane.b32.xlu0 %v1604_v0, %s1390_s20  ;;  %s1392_s24 = smov 127   ;;  %s1393_s27 = smov 110   ;;  %434 = vmatprep.mubr.f32.mxu0 %v1396_v8  ;;  %vm347_vm1 = vcmask 1039360   ;;  %vm1399_vm4 = vmmov 1  }
  0x6c   : > { %s1394_s28 = smov 112   ;;  %s1395_s22 = smov 96   ;;  %v217_v10 = vand.u32 127, %v216_v9  ;;  %vm282_vm7 = vcmask 1031168   ;;  %vm308_vm9 = vcmask 900096   ;;  %vm1897_vm10 = vcmask 916480  }
  0x6d   : > { %s1397_s4 = smov 94   ;;  %s1398_s5 = smov 95   ;;  %v448_v19 = vld [vmem:[#allocation7 + $0x8] sm:$0xff] }
  0x6e   : > { %v218_v11 = vadd.s32 128, %v217_v10  ;;  %v223_v13 = vand.u32 15, %v217_v10  ;;  %s875_s7 = sshll.u32 %s1592_s21, 6  ;;  %s924_s11 = sshll.u32 %s1444_s16, 10 }
  0x6f   : > { %255 = vrot.lane.b32.xlu0 %v1608_v1, %s1390_s20  ;;  %s215_s8 = scalar_lea.vmem [#allocation8], %s875_s7  ;;  %s1846_s26 = scalar_lea.hbm %s1893_s3, %s924_s11 }
  0x70   : > { %v230_v12 = vand.u32 15, %v218_v11  ;;  %vm1635_vm3 = vcmp.ge.s32.totalorder %v223_v13, 1  ;;  %vm1663_vm11 = vcmp.le.s32.totalorder %v223_v13, 14  ;;  %s771_s23 = sshll.u32 %s215_s8, 4  ;;  %s758_s29 = scalar_lea.sflag [#allocation4], %s1592_s21  ;;  %s1841_s23 = int_to_ptr.vmem [resolvable:$true] %s771_s23 }
  0x71   : > { %vm1651_vm6 = vmpackc.low %vm1399_vm4, %vm1635_vm3  ;;  %s1311_s30 = scalar_lea.vmem %s1841_s23, 1024  ;;  %p1932_p0 = scmp.ne.s32.totalorder %s1903_s10, 0 }
  0x72   : > { %vm1631_vm2 = vcmp.ge.s32.totalorder %v230_v12, 1  ;;  %vm1657_vm8 = vcmp.le.s32.totalorder %v230_v12, 14  ;;  %vm935_vm13 = vmpackc.low %vm1635_vm3, %vm1663_vm11  ;;  %p1312_p8 = scmp.ne.s32.totalorder %s1841_s23, %s1311_s30  ;;  %s1400_s16 = smov [#allocation8]  }
  0x73   : > { %vm1643_vm5 = vmpackc.low %vm1399_vm4, %vm1631_vm2 }
  0x74   : > { %vm932_vm12 = vmpackc.low %vm1631_vm2, %vm1657_vm8  ;;  %p1313_p1 = pnand %p1312_p8, %p1932_p0 }
  0x75   : > { %vm938_vm14 = vmpackc.low %vm1657_vm8, %vm1399_vm4 }
  0x76   : > { %vm941_vm15 = vmpackc.low %vm1663_vm11, %vm1399_vm4  ;;  %vm334_vm4 = vcmask 769024   ;;  %p1314_p3 = pneg %p1313_p1 }
  0xdd   : > { %v254_v2 = vpop.permute.xlu0 %253 }
  0xde   : > { %v262_v7 = vsel %vm257_vm0, 0.0, %v254_v2 }
  0xe1   : > { %v256_v3 = vpop.permute.xlu0 %255 }
  0xe2   : > { %v258_v4 = vsel %vm257_vm0, %v254_v2, %v256_v3  ;;  %v263_v5 = vsel %vm257_vm0, %v256_v3, 0.0 }
  0xe3   : > { %v1085_v6 = vpack.i.bf16 %v263_v5, %v258_v4 }
  0xe5   : > { %1086 = vrot.lane.b32.xlu0 %v1085_v6, %s1391_s18  ;;  %1081 = vrot.lane.b32.xlu1 %v1085_v6, %s1392_s24 }
  0xe9   : > { %276 = vrot.lane.b32.xlu0 %v262_v7, %s1391_s18  ;;  %341 = vrot.lane.b32.xlu1 %v262_v7, %s1392_s24 }
  0xed   : > { %1096 = vrot.lane.b32.xlu0 %v1085_v6, %s1393_s27  ;;  %1091 = vrot.lane.b32.xlu1 %v1085_v6, %s1394_s28 }
  0xf1   : > { %1101 = vrot.lane.b32.xlu0 %v1085_v6, %s1395_s22  ;;  %289 = vrot.lane.b32.xlu1 %v262_v7, %s1394_s28 }
  0xf5   : > { %315 = vrot.lane.b32.xlu0 %v262_v7, %s1395_s22  ;;  %302 = vrot.lane.b32.xlu1 %v262_v7, %s1393_s27 }
  0xf9   : > { %330 = vrot.lane.b32.xlu0 %v258_v4, %s1397_s4  ;;  %1106 = vrot.lane.b32.xlu1 %v1085_v6, %s1398_s5  ;;  %v250_v6 = vld [vmem:[#allocation5 + $0x8] sm:$0xff] }
  0xfd   : > { %328 = vrot.lane.b32.xlu0 %v262_v7, %s1397_s4  ;;  %352 = vrot.lane.b32.xlu1 %v262_v7, %s1398_s5 }
 0x101   : > { %332 = vrot.lane.b32.xlu1 %v263_v5, %s1397_s4 }
 0x157   : > { %v1087_v14 = vpop.permute.xlu0 %1086  ;;  %v1082_v15 = vpop.permute.xlu1 %1081 }
 0x158   : > { %v1084_v17 = vunpack.i.h.bf16 %v1082_v15  ;;  %v1083_v18 = vunpack.i.l.bf16 %v1082_v15  ;;  %v1089_v28 = vunpack.i.h.bf16 %v1087_v14  ;;  %v1088_v29 = vunpack.i.l.bf16 %v1087_v14 }
 0x15a   : > { %v349_v20 = vsel %vm347_vm1, %v1083_v18, %v1084_v17  ;;  %v284_v38 = vsel %vm282_vm7, %v1088_v29, %v1089_v28 }
 0x15b   : > { %v277_v22 = vpop.permute.xlu0 %276  ;;  %v342_v23 = vpop.permute.xlu1 %341  ;;  %v925_v24 = vpack.c.bf16 %v349_v20, %v258_v4  ;;  %v249_v4 = vld [vmem:[#allocation5] sm:$0xff] }
 0x15c   : > { %v348_v25 = vsel %vm347_vm1, %v342_v23, %v1083_v18  ;;  %v283_v44 = vsel %vm282_vm7, %v277_v22, %v1088_v29 }
 0x15d   : > { %v928_v27 = vpack.c.bf16 %v348_v25, %v262_v7  ;;  %927 = vmatprep.subr.msk.bf16.mxu0 %vm1643_vm5, %v925_v24 }
 0x15f   : > { %v1097_v31 = vpop.permute.xlu0 %1096  ;;  %v1092_v32 = vpop.permute.xlu1 %1091  ;;  %930 = vmatpush1.bf16.msk.msra.mxu0 %vm1651_vm6, %v928_v27 }
 0x160   : > { %v1099_v33 = vunpack.i.h.bf16 %v1097_v31  ;;  %v1098_v34 = vunpack.i.l.bf16 %v1097_v31  ;;  %v1094_v35 = vunpack.i.h.bf16 %v1092_v32  ;;  %v1093_v36 = vunpack.i.l.bf16 %v1092_v32 }
 0x162   : > { %v297_v39 = vsel %vm1897_vm10, %v1093_v36, %v1094_v35  ;;  %v310_v40 = vsel %vm308_vm9, %v1098_v34, %v1099_v33 }
 0x163   : > { %v931_v41 = vpack.c.bf16 %v297_v39, %v284_v38  ;;  %v1102_v42 = vpop.permute.xlu0 %1101  ;;  %v290_v43 = vpop.permute.xlu1 %289  ;;  %v937_v47 = vpack.c.bf16 %v310_v40, %v1608_v1 }
 0x164   : > { %v296_v45 = vsel %vm1897_vm10, %v290_v43, %v1093_v36  ;;  %v1104_v52 = vunpack.i.h.bf16 %v1102_v42  ;;  %v1103_v53 = vunpack.i.l.bf16 %v1102_v42  ;;  %vm358_vm10 = vcmask 777216  }
 0x165   : > { %v934_v46 = vpack.c.bf16 %v296_v45, %v283_v44  ;;  %933 = vmatprep.subr.msk.bf16.mxu0 %vm932_vm12, %v931_v41  ;;  %vm321_vm12 = vcmask 785408  }
 0x166   : > { %v323_v58 = vsel %vm321_vm12, %v1103_v53, %v1104_v52 }
 0x167   : > { %v316_v48 = vpop.permute.xlu0 %315  ;;  %v303_v49 = vpop.permute.xlu1 %302  ;;  %936 = vmatpush1.bf16.msk.msra.mxu0 %vm935_vm13, %v934_v46  ;;  %vm363_vm13 = vcmask 588800  }
 0x168   : > { %v309_v50 = vsel %vm308_vm9, %v303_v49, %v1098_v34  ;;  %939 = vmatprep.subr.msk.bf16.mxu0 %vm938_vm14, %v937_v47  ;;  %v322_v62 = vsel %vm321_vm12, %v316_v48, %v1103_v53 }
 0x169   : > { %v940_v51 = vpack.c.bf16 %v309_v50, %v1604_v0 }
 0x16b   : > { %v1107_v54 = vpop.permute.xlu1 %1106  ;;  %942 = vmatpush1.bf16.msk.msra.mxu0 %vm941_vm15, %v940_v51  ;;  %v331_v57 = vpop.permute.xlu0 %330 }
 0x16c   : > { %v1109_v55 = vunpack.i.h.bf16 %v1107_v54  ;;  %v1108_v56 = vunpack.i.l.bf16 %v1107_v54 }
 0x16e   : > { %v360_v59 = vsel %vm358_vm10, %v1108_v56, %v1109_v55 }
 0x16f   : > { %v943_v60 = vpack.c.bf16 %v360_v59, %v323_v58  ;;  %v353_v61 = vpop.permute.xlu1 %352  ;;  %v329_v1 = vpop.permute.xlu0 %328 }
 0x170   : > { %v359_v63 = vsel %vm358_vm10, %v353_v61, %v1108_v56  ;;  %v335_v5 = vsel %vm334_vm4, %v329_v1, %v331_v57 }
 0x171   : > { %v946_v0 = vpack.c.bf16 %v359_v63, %v322_v62  ;;  %945 = vmatprep.subr.msk.bf16.mxu0 %vm1643_vm5, %v943_v60  ;;  %vm1732_vm5 = vmpackc.low %vm1631_vm2, %vm1631_vm2 }
 0x172   : > { %vm1786_vm2 = vmpackc.low %vm1663_vm11, %vm1663_vm11 }
 0x173   : > { %v333_v2 = vpop.permute.xlu1 %332  ;;  %948 = vmatpush1.bf16.msk.msra.mxu0 %vm1651_vm6, %v946_v0  ;;  %vm1740_vm6 = vmpackc.low %vm1635_vm3, %vm1635_vm3  ;;  %vm1928_vm3 = vcmask 916480  }
 0x174   : > { %v336_v3 = vsel %vm334_vm4, %v331_v57, %v333_v2  ;;  %vm1931_vm14 = vmmov %vm1928_vm3 }
 0x175   : > { %886 = vmatprep.subr.msk.mxu0 %vm1657_vm8, %v336_v3 }
 0x177   : > { %887 = vmatpush1.msk.msra.mxu0 %vm1663_vm11, %v335_v5  ;;  %v451_v5 = vld [vmem:[#allocation7 + $0x20] sm:$0xff] }
 0x178   : > { %888 = vmatmul.mubr.msk.f32.vlgmr.msra.gmra.mrb[0].mxu0 %vm363_vm13, %v249_v4 }
 0x179   : > { %440 = vmatprep.mubr.f32.mxu0 %v1396_v8 }
 0x17c   : > { %889 = vmatmul.mubr.msk.f32.gmra.mrb[2].mxu0 %vm363_vm13, %v250_v6 }
 0x24b   : > { %v1704_v7 = vpop.f32.mrb[0].mxu0 }
 0x24c   : > { %v1706_v9 = vpop.f32.mrb[1].mxu0 }
 0x24d   : > { %v1110_v10 = vpack.i.bf16 %v1706_v9, %v1704_v7 }
 0x24f   : > { %1111 = vrot.lane.b32.xlu1 %v1110_v10, %s1390_s20  ;;  %v1711_v11 = vpop.f32.mrb[2].mxu0 }
 0x250   : > { %v973_v12 = vpack.c.bf16 %v1711_v11, %v1704_v7  ;;  %v1715_v13 = vpop.f32.mrb[3].mxu0 }
 0x251   : > { %v1115_v8 = vpack.i.bf16 %v1715_v13, %v1711_v11  ;;  %v971_v14 = vpack.c.bf16 %v1715_v13, %v1706_v9 }
 0x253   : > { %1116 = vrot.lane.b32.xlu0 %v1115_v8, %s1390_s20  ;;  %s1315_s20 = sshll.u32 %s1400_s16, 4  ;;  %s1316_s20 = int_to_ptr.vmem [resolvable:$false] %s1315_s20 }
 0x254   : > { %p1318_p5 = scmp.lt.s32.totalorder %s1841_s23, %s1316_s20 }
 0x2c1   : > { %v1112_v15 = vpop.permute.xlu1 %1111 }
 0x2c2   : > { %v1114_v17 = vunpack.i.h.bf16 %v1112_v15  ;;  %v1113_v18 = vunpack.i.l.bf16 %v1112_v15 }
 0x2c4   : > { %v477_v20 = vsel %vm257_vm0, %v1114_v17, 0.0  ;;  %v467_v21 = vsel %vm257_vm0, %v1113_v18, %v1114_v17  ;;  %v475_v26 = vsel %vm257_vm0, 0.0, %v1113_v18 }
 0x2c5   : > { %v1117_v22 = vpop.permute.xlu0 %1116  ;;  %v1120_v23 = vpack.i.bf16 %v477_v20, %v467_v21 }
 0x2c6   : > { %v1119_v24 = vunpack.i.h.bf16 %v1117_v22  ;;  %v1118_v25 = vunpack.i.l.bf16 %v1117_v22 }
 0x2c7   : > { %1121 = vrot.lane.b32.xlu1 %v1120_v23, %s1392_s24  ;;  %1126 = vrot.lane.b32.xlu0 %v1120_v23, %s1391_s18 }
 0x2c8   : > { %v468_v27 = vsel %vm257_vm0, %v1118_v25, %v1119_v24  ;;  %v476_v28 = vsel %vm257_vm0, 0.0, %v1118_v25  ;;  %v478_v34 = vsel %vm257_vm0, %v1119_v24, 0.0  ;;  %vm647_vm0 = vcmask 130048  }
 0x2c9   : > { %v1140_v29 = vpack.i.bf16 %v476_v28, %v475_v26  ;;  %v949_v31 = vpack.c.bf16 %v468_v27, %v467_v21  ;;  %v952_v33 = vpack.c.bf16 %v476_v28, %v475_v26  ;;  %v1145_v16 = vpack.i.bf16 %v478_v34, %v468_v27  ;;  %914 = vmatprep.mubr.msk.f32.mxu1 %vm647_vm0, %v448_v19 }
 0x2cb   : > { %1131 = vrot.lane.b32.xlu1 %v1120_v23, %s1394_s28  ;;  %1141 = vrot.lane.b32.xlu0 %v1140_v29, %s1391_s18 }
 0x2cc   : > { %951 = vmatprep.subr.msk.bf16.mxu1 %vm1732_vm5, %v949_v31 }
 0x2cd   : > { %954 = vmatpush1.bf16.msk.msra.mxu1 %vm1740_vm6, %v952_v33 }
 0x2cf   : > { %1136 = vrot.lane.b32.xlu1 %v1140_v29, %s1392_s24  ;;  %1146 = vrot.lane.b32.xlu0 %v1145_v16, %s1392_s24 }
 0x2d3   : > { %1151 = vrot.lane.b32.xlu1 %v1145_v16, %s1391_s18  ;;  %1161 = vrot.lane.b32.xlu0 %v1120_v23, %s1393_s27  ;;  %s1317_s18 = scalar_lea.vmem %s1316_s20, 2048 }
 0x2d4   : > { %p1319_p9 = scmp.lt.s32.totalorder %s1317_s18, %s1311_s30 }
 0x2d6   : > { %p1320_p12 = por %p1319_p9, %p1318_p5 }
 0x2d7   : > { %1156 = vrot.lane.b32.xlu1 %v1140_v29, %s1394_s28  ;;  %1166 = vrot.lane.b32.xlu0 %v1145_v16, %s1394_s28 }
 0x2d8   : > { %p1321_p2 = pnand %p1320_p12, %p1314_p3 }
 0x2db   : > { %1176 = vrot.lane.b32.xlu1 %v1120_v23, %s1395_s22  ;;  %1171 = vrot.lane.b32.xlu0 %v1140_v29, %s1393_s27 }
 0x2df   : > { %1181 = vrot.lane.b32.xlu1 %v1145_v16, %s1393_s27  ;;  %1191 = vrot.lane.b32.xlu0 %v1120_v23, %s1398_s5 }
 0x2e3   : > { %1186 = vrot.lane.b32.xlu1 %v1140_v29, %s1395_s22  ;;  %1196 = vrot.lane.b32.xlu0 %v1145_v16, %s1395_s22 }
 0x2e7   : > { %1206 = vrot.lane.b32.xlu1 %v1145_v16, %s1398_s5  ;;  %1201 = vrot.lane.b32.xlu0 %v1140_v29, %s1398_s5 }
 0x2eb   : > { %1211 = vrot.lane.b32.xlu1 %v1120_v23, %s1397_s4  ;;  %1216 = vrot.lane.b32.xlu0 %v1145_v16, %s1397_s4 }
 0x2ef   : > { %1221 = vrot.lane.b32.xlu1 %v1140_v29, %s1397_s4 }
 0x339   : > { %v1122_v36 = vpop.permute.xlu1 %1121  ;;  %v1127_v38 = vpop.permute.xlu0 %1126 }
 0x33a   : > { %v1124_v41 = vunpack.i.h.bf16 %v1122_v36  ;;  %v1123_v42 = vunpack.i.l.bf16 %v1122_v36  ;;  %v1129_v49 = vunpack.i.h.bf16 %v1127_v38  ;;  %v1128_v50 = vunpack.i.l.bf16 %v1127_v38 }
 0x33c   : > { %v620_v51 = vsel %vm347_vm1, %v1123_v42, %v1124_v41  ;;  %v500_v63 = vsel %vm282_vm7, %v1128_v50, %v1129_v49 }
 0x33d   : > { %v1132_v39 = vpop.permute.xlu1 %1131  ;;  %v1142_v40 = vpop.permute.xlu0 %1141 }
 0x33e   : > { %v1143_v52 = vunpack.i.l.bf16 %v1142_v40  ;;  %v1144_v60 = vunpack.i.h.bf16 %v1142_v40  ;;  %v1134_v0 = vunpack.i.h.bf16 %v1132_v39  ;;  %v1133_v1 = vunpack.i.l.bf16 %v1132_v39 }
 0x340   : > { %v499_v2 = vsel %vm282_vm7, %v1143_v52, %v1128_v50  ;;  %v524_v22 = vsel %vm1928_vm3, %v1133_v1, %v1134_v0 }
 0x341   : > { %v1137_v43 = vpop.permute.xlu1 %1136  ;;  %v1147_v44 = vpop.permute.xlu0 %1146 }
 0x342   : > { %v1139_v45 = vunpack.i.h.bf16 %v1137_v43  ;;  %v1138_v46 = vunpack.i.l.bf16 %v1137_v43  ;;  %v1149_v47 = vunpack.i.h.bf16 %v1147_v44  ;;  %v1148_v48 = vunpack.i.l.bf16 %v1147_v44 }
 0x344   : > { %v622_v53 = vsel %vm347_vm1, %v1148_v48, %v1149_v47  ;;  %v619_v54 = vsel %vm347_vm1, %v1138_v46, %v1123_v42  ;;  %v621_v55 = vsel %vm347_vm1, %v1139_v45, %v1148_v48  ;;  %vm1779_vm1 = vmpackc.low %vm1657_vm8, %vm1657_vm8 }
 0x345   : > { %v1152_v56 = vpop.permute.xlu1 %1151  ;;  %v1162_v57 = vpop.permute.xlu0 %1161  ;;  %v955_v58 = vpack.c.bf16 %v622_v53, %v620_v51  ;;  %v957_v59 = vpack.c.bf16 %v621_v55, %v619_v54  ;;  %vm1930_vm8 = vmmov %vm1928_vm3 }
 0x346   : > { %v1154_v61 = vunpack.i.h.bf16 %v1152_v56  ;;  %v1153_v62 = vunpack.i.l.bf16 %v1152_v56  ;;  %v1164_v29 = vunpack.i.h.bf16 %v1162_v57  ;;  %v1163_v31 = vunpack.i.l.bf16 %v1162_v57 }
 0x347   : > { %956 = vmatprep.subr.bf16.mxu1 %v955_v58 }
 0x348   : > { %v501_v3 = vsel %vm282_vm7, %v1144_v60, %v1153_v62  ;;  %v502_v4 = vsel %vm282_vm7, %v1153_v62, %v1154_v61  ;;  %958 = vmatpush1.bf16.msra.mxu1 %v957_v59  ;;  %vm1929_vm7 = vmmov %vm1928_vm3  ;;  %v548_v41 = vsel %vm308_vm9, %v1163_v31, %v1164_v29  ;;  %v453_v29 = vld [vmem:[#allocation7 + $0x30] sm:$0xff] }
 0x349   : > { %v959_v6 = vpack.c.bf16 %v502_v4, %v500_v63  ;;  %v962_v10 = vpack.c.bf16 %v501_v3, %v499_v2  ;;  %v1157_v8 = vpop.permute.xlu1 %1156  ;;  %v1167_v15 = vpop.permute.xlu0 %1166 }
 0x34a   : > { %v1159_v18 = vunpack.i.h.bf16 %v1157_v8  ;;  %v1158_v20 = vunpack.i.l.bf16 %v1157_v8  ;;  %v1169_v21 = vunpack.i.h.bf16 %v1167_v15  ;;  %v1168_v30 = vunpack.i.l.bf16 %v1167_v15 }
 0x34b   : > { %961 = vmatprep.subr.msk.bf16.mxu1 %vm1779_vm1, %v959_v6 }
 0x34c   : > { %v523_v23 = vsel %vm1929_vm7, %v1158_v20, %v1133_v1  ;;  %v525_v24 = vsel %vm1930_vm8, %v1159_v18, %v1168_v30  ;;  %v526_v37 = vsel %vm1931_vm14, %v1168_v30, %v1169_v21  ;;  %964 = vmatpush1.bf16.msk.msra.mxu1 %vm1786_vm2, %v962_v10 }
 0x34d   : > { %v965_v25 = vpack.c.bf16 %v526_v37, %v524_v22  ;;  %v968_v26 = vpack.c.bf16 %v525_v24, %v523_v23  ;;  %v1177_v27 = vpop.permute.xlu1 %1176  ;;  %v1172_v28 = vpop.permute.xlu0 %1171  ;;  %v447_v37 = vld [vmem:[#allocation7] sm:$0xff] }
 0x34e   : > { %v1173_v33 = vunpack.i.l.bf16 %v1172_v28  ;;  %v1174_v19 = vunpack.i.h.bf16 %v1172_v28  ;;  %v1179_v39 = vunpack.i.h.bf16 %v1177_v27  ;;  %v1178_v40 = vunpack.i.l.bf16 %v1177_v27  ;;  %v452_v27 = vld [vmem:[#allocation7 + $0x28] sm:$0xff]  ;;  %v454_v28 = vld [vmem:[#allocation7 + $0x38] sm:$0xff] }
 0x34f   : > { %967 = vmatprep.subr.msk.bf16.mxu1 %vm1732_vm5, %v965_v25  ;;  %v450_v25 = vld [vmem:[#allocation7 + $0x18] sm:$0xff] }
 0x350   : > { %970 = vmatpush1.bf16.msk.msra.mxu1 %vm1740_vm6, %v968_v26  ;;  %v547_v42 = vsel %vm308_vm9, %v1173_v33, %v1163_v31  ;;  %v572_v50 = vsel %vm321_vm12, %v1178_v40, %v1179_v39  ;;  %v449_v26 = vld [vmem:[#allocation7 + $0x10] sm:$0xff] }
 0x351   : > { %v1182_v34 = vpop.permute.xlu1 %1181  ;;  %v1192_v16 = vpop.permute.xlu0 %1191  ;;  %972 = vmatprep.subr.bf16.mxu1 %v971_v14 }
 0x352   : > { %v1184_v36 = vunpack.i.h.bf16 %v1182_v34  ;;  %v1183_v38 = vunpack.i.l.bf16 %v1182_v34  ;;  %v1194_v51 = vunpack.i.h.bf16 %v1192_v16  ;;  %v1193_v52 = vunpack.i.l.bf16 %v1192_v16 }
 0x354   : > { %v549_v43 = vsel %vm308_vm9, %v1174_v19, %v1183_v38  ;;  %v550_v44 = vsel %vm308_vm9, %v1183_v38, %v1184_v36  ;;  %974 = vmatpush1.bf16.msra.mxu1 %v973_v12  ;;  %v640_v61 = vsel %vm358_vm10, %v1193_v52, %v1194_v51 }
 0x355   : > { %v975_v45 = vpack.c.bf16 %v550_v44, %v548_v41  ;;  %v978_v9 = vpack.c.bf16 %v549_v43, %v547_v42  ;;  %v1187_v13 = vpop.permute.xlu1 %1186  ;;  %v1197_v14 = vpop.permute.xlu0 %1196 }
 0x356   : > { %v1189_v46 = vunpack.i.h.bf16 %v1187_v13  ;;  %v1188_v47 = vunpack.i.l.bf16 %v1187_v13  ;;  %v1199_v48 = vunpack.i.h.bf16 %v1197_v14  ;;  %v1198_v49 = vunpack.i.l.bf16 %v1197_v14 }
 0x357   : > { %977 = vmatprep.subr.msk.bf16.mxu1 %vm1779_vm1, %v975_v45 }
 0x358   : > { %v571_v53 = vsel %vm321_vm12, %v1188_v47, %v1178_v40  ;;  %v573_v7 = vsel %vm321_vm12, %v1189_v46, %v1198_v49  ;;  %v574_v11 = vsel %vm321_vm12, %v1198_v49, %v1199_v48  ;;  %980 = vmatpush1.bf16.msk.msra.mxu1 %vm1786_vm2, %v978_v9 }
 0x359   : > { %v981_v12 = vpack.c.bf16 %v574_v11, %v572_v50  ;;  %v984_v54 = vpack.c.bf16 %v573_v7, %v571_v53  ;;  %v1207_v55 = vpop.permute.xlu1 %1206  ;;  %v1202_v56 = vpop.permute.xlu0 %1201 }
 0x35a   : > { %v1209_v57 = vunpack.i.h.bf16 %v1207_v55  ;;  %v1208_v58 = vunpack.i.l.bf16 %v1207_v55  ;;  %v1204_v59 = vunpack.i.h.bf16 %v1202_v56  ;;  %v1203_v60 = vunpack.i.l.bf16 %v1202_v56 }
 0x35b   : > { %983 = vmatprep.subr.msk.bf16.mxu1 %vm1732_vm5, %v981_v12 }
 0x35c   : > { %986 = vmatpush1.bf16.msk.msra.mxu1 %vm1740_vm6, %v984_v54  ;;  %v642_v62 = vsel %vm358_vm10, %v1208_v58, %v1209_v57  ;;  %v639_v63 = vsel %vm358_vm10, %v1203_v60, %v1193_v52  ;;  %v641_v0 = vsel %vm358_vm10, %v1204_v59, %v1208_v58 }
 0x35d   : > { %v1212_v1 = vpop.permute.xlu1 %1211  ;;  %v1217_v2 = vpop.permute.xlu0 %1216  ;;  %v987_v3 = vpack.c.bf16 %v642_v62, %v640_v61  ;;  %v989_v4 = vpack.c.bf16 %v641_v0, %v639_v63 }
 0x35e   : > { %v1214_v6 = vunpack.i.h.bf16 %v1212_v1  ;;  %v1213_v10 = vunpack.i.l.bf16 %v1212_v1  ;;  %v1219_v8 = vunpack.i.h.bf16 %v1217_v2  ;;  %v1218_v32 = vunpack.i.l.bf16 %v1217_v2 }
 0x35f   : > { %988 = vmatprep.subr.bf16.mxu1 %v987_v3 }
 0x360   : > { %v596_v35 = vsel %vm334_vm4, %v1213_v10, %v1214_v6  ;;  %v598_v15 = vsel %vm334_vm4, %v1218_v32, %v1219_v8  ;;  %990 = vmatpush1.bf16.msra.mxu1 %v989_v4 }
 0x361   : > { %v991_v18 = vpack.c.bf16 %v598_v15, %v596_v35  ;;  %v1222_v20 = vpop.permute.xlu1 %1221 }
 0x362   : > { %v1224_v21 = vunpack.i.h.bf16 %v1222_v20  ;;  %v1223_v30 = vunpack.i.l.bf16 %v1222_v20 }
 0x363   : > { %993 = vmatprep.subr.msk.bf16.mxu1 %vm1779_vm1, %v991_v18 }
 0x364   : > { %v595_v22 = vsel %vm334_vm4, %v1223_v30, %v1213_v10  ;;  %v597_v23 = vsel %vm334_vm4, %v1224_v21, %v1218_v32 }
 0x365   : > { %v994_v24 = vpack.c.bf16 %v597_v23, %v595_v22 }
 0x367   : > { %996 = vmatpush1.bf16.msk.msra.mxu1 %vm1786_vm2, %v994_v24 }
 0x36a   : > { %725 = vmatmul.mubr.f32.vlgmr.msra.gmra.mrb[0].mxu1 %v447_v37 }
 0x36b   : > { %915 = vmatprep.mubr.msk.f32.mxu1 %vm647_vm0, %v450_v25 }
 0x36e   : > { %731 = vmatmul.mubr.f32.gmra.mrb[2].mxu1 %v449_v26 }
 0x36f   : > { %916 = vmatprep.mubr.msk.f32.mxu1 %vm647_vm0, %v452_v27 }
 0x372   : > { %737 = vmatmul.mubr.f32.gmra.mrb[4].mxu1 %v451_v5 }
 0x373   : > { %917 = vmatprep.mubr.msk.f32.mxu1 %vm647_vm0, %v454_v28 }
 0x376   : > { %743 = vmatmul.mubr.f32.gmra.mrb[6].mxu1 %v453_v29 }
 0x43d   : > { %v726_v17 = vpop.f32.mrb[0].mxu1 }
 0x43e   : > { %749 = vst [vmem:[%s215_s8] sm:$0xff] %v726_v17  ;;  %v728_v31 = vpop.f32.mrb[1].mxu1 }
 0x43f   : > { %750 = vst [vmem:[%s215_s8 + $0x8] sm:$0xff] %v728_v31 }
 0x441   : > { %v732_v33 = vpop.f32.mrb[2].mxu1 }
 0x442   : > { %751 = vst [vmem:[%s215_s8 + $0x10] sm:$0xff] %v732_v33  ;;  %v734_v34 = vpop.f32.mrb[3].mxu1 }
 0x443   : > { %752 = vst [vmem:[%s215_s8 + $0x18] sm:$0xff] %v734_v34 }
 0x445   : > { %v738_v16 = vpop.f32.mrb[4].mxu1 }
 0x446   : > { %753 = vst [vmem:[%s215_s8 + $0x20] sm:$0xff] %v738_v16  ;;  %v740_v19 = vpop.f32.mrb[5].mxu1 }
 0x447   : > { %754 = vst [vmem:[%s215_s8 + $0x28] sm:$0xff] %v740_v19 }
 0x449   : > { %v744_v36 = vpop.f32.mrb[6].mxu1 }
 0x44a   : > { %755 = vst [vmem:[%s215_s8 + $0x30] sm:$0xff] %v744_v36  ;;  %v746_v38 = vpop.f32.mrb[7].mxu1 }
 0x44b   : > { %756 = vst [vmem:[%s215_s8 + $0x38] sm:$0xff] %v746_v38 }
 0x44c   : > { %1324 = shalt.err (!%p1321_p2)
}
 0x44d   : > { %s1325_s24 = scalar_lea.hbm %s1846_s26, 1024  ;;  %s1329_s22 = scalar_lea.hbm %s1893_s3, 2048 }
 0x44e   : > { %p1326_p13 = scmp.ne.s32.totalorder %s1846_s26, %s1325_s24  ;;  %p1330_p4 = scmp.lt.u32.totalorder %s1846_s26, %s1893_s3 }
 0x44f   : > { %p1331_p7 = scmp.lt.u32.totalorder %s1329_s22, %s1325_s24  ;;  %p1333_p8 = scmp.lt.u32.totalorder %s1325_s24, %s1846_s26 }
 0x450   : > { %p1327_p6 = pnand %p1326_p13, %p1932_p0 }
 0x451   : > { %p1332_p11 = por %p1331_p7, %p1330_p4 }
 0x452   : > { %p1328_p10 = pneg %p1327_p6 }
 0x453   : > { %p1334_p1 = por %p1333_p8, %p1332_p11 }
 0x455   : > { %p1335_p3 = pnand %p1334_p1, %p1328_p10 }
 0x457   : > { %1338 = shalt.err (!%p1335_p3)
}
 0x458   : > { %s1401_s7 = smov 256   ;;  %s1402_s8 = smov 16  }
 0x459   : > { %1007 = dma.vmem_to_hbm [thread:$0]  (%p1932_p0), %s1841_s23, 1024, %s1846_s26, %s758_s29, %s1401_s7, %s1401_s7, %s1402_s8  }
 0x45a PF: > { %s786_s11 = sand.u32 1, %s1369_s12   ;;  %p1933_p5 = scmp.ne.s32.totalorder %s1899_s19, 0 }
 0x45b   : > { %p1934_p9 = scmp.ge.s32.totalorder %s1381_s15, 2  ;;  %s787_s25 = scalar_lea.sflag [#allocation4], %s786_s11 }
 0x45d   : > { %p1021_p12 = pnand %p1934_p9, %p1933_p5 }
 0x45f   : > { %1364 = dma.done.wait (!%p1021_p12), %s787_s25, 1024  }
 0x460   : > { %1366 = vsyncadd (!%p1021_p12), %s787_s25, 4294966272  ;;  %p17_p2 = scmp.ge.s32.totalorder %s1533_s6, 4   ;;  %s1935_s12 = smov %s1373_s13 }
 0x461   : > { %s1936_s13 = smov %s1377_s14  ;;  %s1937_s14 = smov %s1542_s9 }
 0x462   : > { %s1938_s15 = smov %s1533_s6  ;;  %19 = sbr.rel (!%p17_p2) target bundleno = 6 (0x6), region = 85 }
 0x469   :  { %792 = vsyncpa [#allocation3], 1 }
 0x46a   :  { %794 = vsyncpa [#allocation3 + $0x1], 1 }
 0x46b   :  { %795 = vsyncpa [#allocation6], 1 }
 0x46c   :  { %796 = vsyncpa [#allocation4], 1 }
 0x46d   :  { %798 = vsyncpa [#allocation4 + $0x1], 1 }

</bundles_post_ra>
